<compile_context>
chip_gen: v6e
topology: v6e:2x2x1
jax: 0.10.0
libtpu: 0.0.40
codegen_flags: <defaults>
</compile_context>

<pallas_src>
import jax
import jax.numpy as jnp
from jax.experimental import pallas as pl
from jax.experimental.pallas import tpu as pltpu

HIDDEN = 32                     # LRGCN output channels
NUM_GATES = 4                   # i, f, c, o
GATE_W = NUM_GATES * HIDDEN     # 128 lanes: [i | f | c | o]
TM_MAX = 512                    # row-tile upper bound (v5e/v6e roofline sweet spot)
TK_MAX = 8192                   # reduction-tile upper bound


def _round_up(x, m):
    return ((x + m - 1) // m) * m


def _vmem_capacity_bytes():
    """Per-TensorCore VMEM capacity; conservative (v7x) fallback if unknown."""
    try:
        info = pltpu.get_tpu_info()
        cap = getattr(info, "vmem_capacity_bytes", None)
        if cap:
            return int(cap)
    except Exception:
        pass
    return 64 * 1024 * 1024


def _vmem_bytes(tm, tk):
    """Full resident-VMEM estimate for one TensorCore:
    LHS/RHS double buffers + c0 tile (lane-padded) + out slab + accumulator
    + small weight tiles (slop)."""
    lhs = 2 * tm * tk * 2            # bf16, 2 buffers
    rhs = 2 * tk * GATE_W * 2        # bf16, 2 buffers
    c0 = 2 * tm * 128 * 4            # f32 (32 lanes pad to 128), 2 buffers
    out = 2 * tm * GATE_W * 4        # f32 slab, 2 buffers
    acc = tm * GATE_W * 4            # f32 scratch
    small = 1 << 16                  # bias / linear weight tiles, misc
    return lhs + rhs + c0 + out + acc + small


def _choose_tiling(n_rows, raw_cols, budget):
    """Pick (tm, rows_pad, tk, cols_pad). tm multiple of 8, tk multiple of 128,
    cols_pad a multiple of tk, with the FULL VMEM estimate under `budget`."""
    n8 = _round_up(max(n_rows, 8), 8)
    tm = min(TM_MAX, n8)
    cols128 = _round_up(max(raw_cols, 128), 128)
    fixed = 5 * tm * 128 * 4 + (1 << 16)       # c0(2) + out(2) + acc(1) + slop
    per_col = 2 * tm * 2 + 2 * GATE_W * 2      # LHS + RHS bytes per reduction column
    tk = (budget - fixed) // per_col
    tk = (tk // 128) * 128
    tk = max(128, min(TK_MAX, cols128, tk))
    rows_pad = _round_up(n8, tm)
    cols_pad = _round_up(cols128, tk)
    return tm, rows_pad, tk, cols_pad


def _lrgcn_kernel(lhs_ref, rhs_ref, c0_ref, b_ref, wl_ref, bl_ref, out_ref, acc_ref):
    """grid = (row_tiles, k_tiles); k innermost ("arbitrary")."""
    f32 = jnp.float32
    k = pl.program_id(1)

    @pl.when(k == 0)
    def _():
        acc_ref[...] = jnp.zeros_like(acc_ref)

    # Single fused matmul: [A_norm | X,H0] @ [P ; Rx,Rh]  -> (TM, 128) f32 partial.
    acc_ref[...] += jnp.dot(lhs_ref[...], rhs_ref[...], preferred_element_type=f32)

    @pl.when(k == pl.num_programs(1) - 1)
    def _():
        g = acc_ref[...] + b_ref[...]                       # fused RGCN biases
        i_g = jax.nn.sigmoid(g[:, 0 * HIDDEN:1 * HIDDEN])
        f_g = jax.nn.sigmoid(g[:, 1 * HIDDEN:2 * HIDDEN])
        t_g = jnp.tanh(g[:, 2 * HIDDEN:3 * HIDDEN])
        o_g = jax.nn.sigmoid(g[:, 3 * HIDDEN:4 * HIDDEN])

        c_new = f_g * c0_ref[...] + i_g * t_g               # (TM, 32) f32
        h_new = o_g * jnp.tanh(c_new)                       # (TM, 32) f32

        # Linear(32 -> 1): relu(H) . wl as a VPU/XLU reduction (MXU stays free).
        y = jnp.sum(jnp.maximum(h_new, 0.0) * wl_ref[...], axis=-1, keepdims=True)
        y = y + bl_ref[0, 0]                                # (TM, 1)

        # Lane-dense packed slab: [H | C | y | zero-pad] -> one unmasked store.
        tm = h_new.shape[0]
        lane = jax.lax.broadcasted_iota(jnp.int32, (tm, 2 * HIDDEN), 1)
        y_cols = jnp.where(lane == 0, y, 0.0)               # (TM, 64); col 0 holds y
        out_ref[...] = jnp.concatenate([h_new, c_new, y_cols], axis=-1)


def recurrent_gcn_forward(x, edge_index, edge_weight, h_0, c_0, params):
    """Glue in JAX (edge scatter + parameter-sized fusions), hot path in one
    row/K-tiled Pallas call."""
    f32 = jnp.float32
    bf16 = jnp.bfloat16
    n, fin = x.shape
    feat = fin + HIDDEN
    raw_cols = n + feat                       # [ A columns | X,H0 columns ]

    cap = _vmem_capacity_bytes()
    budget = (cap * 3) // 4                   # ~48 MiB on v7x, ~96 MiB on v5e/v6e
    tm, rows_pad, tk, cols_pad = _choose_tiling(n, raw_cols, budget)
    grid = (rows_pad // tm, cols_pad // tk)

    # --- dense mean-aggregation adjacency, built in ONE pass, in bf16 --------
    # The 3rd module arg is the RGCN relation-type vector (num_relations=1 ->
    # all zeros); it selects relation 0 and carries no edge weighting.
    src = edge_index[0]
    dst = edge_index[1]
    rel0 = (edge_weight == 0).astype(f32)
    deg = jnp.zeros((n,), f32).at[dst].add(rel0)            # in-degree, O(E)
    inv_deg = jnp.where(deg > 0.0, 1.0 / jnp.maximum(deg, 1.0), 0.0)
    edge_val = (rel0 * inv_deg[dst]).astype(bf16)           # pre-normalized value

    # Fused LHS: adjacency in columns [0, n), root inputs [X|H0] in [n, n+feat).
    xh = jnp.concatenate([x, h_0], axis=-1)                 # (N, Fin+32) f32
    lhs = jnp.zeros((rows_pad, cols_pad), bf16)
    lhs = lhs.at[dst, src].add(edge_val)                    # scatter directly in bf16
    lhs = lhs.at[:n, n:n + feat].set(xh.astype(bf16))

    # Fused RHS: P = [X|H0] @ [Wx;Wh] on top of the stacked root weight [Rx;Rh].
    w_msg = jnp.concatenate([params["wx"], params["wh"]], axis=0)    # (feat, 128)
    w_root = jnp.concatenate([params["rx"], params["rh"]], axis=0)   # (feat, 128)
    p = jnp.dot(xh, w_msg, preferred_element_type=f32)               # (N, 128)
    rhs = jnp.zeros((cols_pad, GATE_W), f32)
    rhs = rhs.at[:n].set(p)
    rhs = rhs.at[n:n + feat].set(w_root)
    rhs = rhs.astype(bf16)

    c0_pad = jnp.zeros((rows_pad, HIDDEN), f32).at[:n].set(c_0)
    bias = params["bx"] + params["bh"]                               # (1, 128)
    wl_row = params["wl"].reshape(1, HIDDEN)                         # (1, 32)
    bl = params["bl"].reshape(1, 1)                                  # (1, 1) -> SMEM

    # --- pallas_call ----------------------------------------------------------
    vmem_est = _vmem_bytes(tm, tk)
    vmem_limit = int(min(max(vmem_est + (8 << 20), 24 << 20), cap - (12 << 20)))

    cost = pl.CostEstimate(
        flops=int(2 * rows_pad * cols_pad * GATE_W + 16 * rows_pad * GATE_W),
        transcendentals=int(5 * rows_pad * HIDDEN),
        bytes_accessed=int(rows_pad * cols_pad * 2
                           + (rows_pad // tm) * cols_pad * GATE_W * 2
                           + rows_pad * GATE_W * 4 + rows_pad * 128 * 4
                           + GATE_W * 8 + HIDDEN * 4),
    )

    slab = pl.pallas_call(
        _lrgcn_kernel,
        grid=grid,
        in_specs=[
            pl.BlockSpec((tm, tk), lambda i, k: (i, k)),        # fused LHS tile (bf16)
            pl.BlockSpec((tk, GATE_W), lambda i, k: (k, 0)),    # fused RHS tile (bf16)
            pl.BlockSpec((tm, HIDDEN), lambda i, k: (i, 0)),    # C0 tile (f32)
            pl.BlockSpec((1, GATE_W), lambda i, k: (0, 0)),     # fused gate bias
            pl.BlockSpec((1, HIDDEN), lambda i, k: (0, 0)),     # linear weight row
            pl.BlockSpec(memory_space=pltpu.MemorySpace.SMEM),  # linear bias scalar
        ],
        out_specs=pl.BlockSpec((tm, GATE_W), lambda i, k: (i, 0)),
        out_shape=jax.ShapeDtypeStruct((rows_pad, GATE_W), jnp.float32),
        scratch_shapes=[pltpu.VMEM((tm, GATE_W), jnp.float32)],
        compiler_params=pltpu.CompilerParams(
            dimension_semantics=("parallel", "arbitrary"),
            vmem_limit_bytes=vmem_limit),
        cost_estimate=cost,
    )(lhs, rhs, c0_pad, bias, wl_row, bl)

    # Unpack the lane-dense slab (cheap XLA slices).
    h_new = slab[:n, 0:HIDDEN]
    c_new = slab[:n, HIDDEN:2 * HIDDEN]
    y = slab[:n, 2 * HIDDEN:2 * HIDDEN + 1]
    return y, h_new, c_new


def init_params(key, node_features):
    """Deterministic synthetic parameters (shapes follow the torch module)."""
    ks = jax.random.split(key, 8)
    g = GATE_W
    s = 0.1
    return {
        # RGCNConv(x -> gates): message weight (num_bases=1 collapsed), root, bias
        "wx": s * jax.random.normal(ks[0], (node_features, g), jnp.float32),
        "rx": s * jax.random.normal(ks[1], (node_features, g), jnp.float32),
        "bx": s * jax.random.normal(ks[2], (1, g), jnp.float32),
        # RGCNConv(h -> gates)
        "wh": s * jax.random.normal(ks[3], (HIDDEN, g), jnp.float32),
        "rh": s * jax.random.normal(ks[4], (HIDDEN, g), jnp.float32),
        "bh": s * jax.random.normal(ks[5], (1, g), jnp.float32),
        # torch.nn.Linear(32, 1)
        "wl": s * jax.random.normal(ks[6], (HIDDEN, 1), jnp.float32),
        "bl": s * jax.random.normal(ks[7], (1, 1), jnp.float32),
    }


if __name__ == "__main__":
    key = jax.random.PRNGKey(0)
    k_x, k_e, k_h, k_c, k_p = jax.random.split(key, 5)

    NODE_FEATURES = 4
    N_NODES = 16
    N_EDGES = 40

    x = jax.random.normal(k_x, (N_NODES, NODE_FEATURES), jnp.float32)
    edge_index = jax.random.randint(k_e, (2, N_EDGES), 0, N_NODES, jnp.int32)
    # LRGCN's 3rd arg is really the RGCN relation type; num_relations=1 -> zeros.
    edge_weight = jnp.zeros((N_EDGES,), jnp.int32)
    h_0 = jax.random.normal(k_h, (N_NODES, HIDDEN), jnp.float32)
    c_0 = jax.random.normal(k_c, (N_NODES, HIDDEN), jnp.float32)

    params = init_params(k_p, NODE_FEATURES)

    fwd = jax.jit(recurrent_gcn_forward)
    h, h_new, c_new = fwd(x, edge_index, edge_weight, h_0, c_0, params)
    jax.block_until_ready((h, h_new, c_new))

    assert h.shape == (N_NODES, 1)
    assert h_new.shape == (N_NODES, HIDDEN)
    assert c_new.shape == (N_NODES, HIDDEN)
    assert bool(jnp.all(jnp.isfinite(h)))
    assert bool(jnp.all(jnp.isfinite(h_new)))
    assert bool(jnp.all(jnp.isfinite(c_new)))
    print("KERNEL_OK")
</pallas_src>

<mosaic_0001>
module attributes {stable_mosaic.version = 11 : i64} {
  func.func private @main(%arg0: i32) attributes {dimension_semantics = [#tpu.dimension_semantics<core_parallel>], iteration_bounds = array<i64: 2>, tpu.core_type = #tpu.core_type<sc_scalar_subcore>, window_params = []} {
    return
  }
}

module attributes {stable_mosaic.version = 11 : i64} {
  func.func private @main(%arg0: i32) attributes {dimension_semantics = [#tpu.dimension_semantics<core_parallel>], iteration_bounds = array<i64: 2>, tpu.core_type = #tpu.core_type<sc_scalar_subcore>, window_params = []} {
    return
  }
}

module attributes {stable_mosaic.version = 11 : i64} {
  func.func @_lrgcn_kernel(%arg0: i32, %arg1: i32, %arg2: memref<16x128xbf16, #tpu.memory_space<vmem>>, %arg3: memref<128x128xbf16, #tpu.memory_space<vmem>>, %arg4: memref<16x32xf32, #tpu.memory_space<vmem>>, %arg5: memref<1x128xf32, #tpu.memory_space<vmem>>, %arg6: memref<1x32xf32, #tpu.memory_space<vmem>>, %arg7: memref<1x1xf32, #tpu.memory_space<smem>>, %arg8: memref<16x128xf32, #tpu.memory_space<vmem>>, %arg9: memref<16x128xf32, #tpu.memory_space<vmem>>) attributes {dimension_semantics = [#tpu.dimension_semantics<parallel>, #tpu.dimension_semantics<arbitrary>], iteration_bounds = array<i64: 1, 1>, scalar_prefetch = 0 : i64, scratch_operands = 1 : i64, tpu.core_type = #tpu.core_type<tc>, window_params = [{transform_indices = @transform_0, window_bounds = array<i64: 16, 128>}, {transform_indices = @transform_1, window_bounds = array<i64: 128, 128>}, {transform_indices = @transform_2, window_bounds = array<i64: 16, 32>}, {pipeline_mode = #tpu.pipeline_mode<synchronous>, transform_indices = @transform_3, window_bounds = array<i64: 1, 128>}, {pipeline_mode = #tpu.pipeline_mode<synchronous>, transform_indices = @transform_4, window_bounds = array<i64: 1, 32>}, {transform_indices = @transform_5, window_bounds = array<i64: 1, 1>}, {transform_indices = @transform_6, window_bounds = array<i64: 16, 128>}]} {
    %c0_i32 = arith.constant 0 : i32
    %0 = arith.cmpi eq, %arg1, %c0_i32 : i32
    %1 = arith.extui %0 : i1 to i32
    %c0_i32_0 = arith.constant 0 : i32
    %2 = arith.cmpi ne, %1, %c0_i32_0 : i32
    scf.if %2 {
      %cst_10 = arith.constant 0.000000e+00 : f32
      %12 = vector.broadcast %cst_10 : f32 to vector<16x128xf32>
      %c0_11 = arith.constant 0 : index
      %c0_12 = arith.constant 0 : index
      %13 = vector.load %arg9[%c0_11, %c0_12] : memref<16x128xf32, #tpu.memory_space<vmem>>, vector<16x128xf32>
      tpu.vector_store %arg9[%c0_11, %c0_12], %12 {strides = array<i32>} : memref<16x128xf32, #tpu.memory_space<vmem>>, vector<16x128xf32>,
    } else {
    }
    %c0 = arith.constant 0 : index
    %c0_1 = arith.constant 0 : index
    %3 = vector.load %arg9[%c0, %c0_1] : memref<16x128xf32, #tpu.memory_space<vmem>>, vector<16x128xf32>
    %c0_2 = arith.constant 0 : index
    %c0_3 = arith.constant 0 : index
    %4 = vector.load %arg2[%c0_2, %c0_3] : memref<16x128xbf16, #tpu.memory_space<vmem>>, vector<16x128xbf16>
    %c0_4 = arith.constant 0 : index
    %c0_5 = arith.constant 0 : index
    %5 = vector.load %arg3[%c0_4, %c0_5] : memref<128x128xbf16, #tpu.memory_space<vmem>>, vector<128x128xbf16>
    %cst = arith.constant dense<0.000000e+00> : vector<16x128xf32>
    %6 = tpu.matmul %4, %5, %cst {dimension_numbers = #tpu.dot_dimension_numbers<[1], [0], [0], [1], [0, 0, 1, 1], [], []>} : vector<16x128xbf16>, vector<128x128xbf16>, vector<16x128xf32> -> vector<16x128xf32>
    %7 = arith.addf %3, %6 : vector<16x128xf32>
    %c0_6 = arith.constant 0 : index
    %c0_7 = arith.constant 0 : index
    %8 = vector.load %arg9[%c0_6, %c0_7] : memref<16x128xf32, #tpu.memory_space<vmem>>, vector<16x128xf32>
    tpu.vector_store %arg9[%c0_6, %c0_7], %7 {strides = array<i32>} : memref<16x128xf32, #tpu.memory_space<vmem>>, vector<16x128xf32>,
    %c0_i32_8 = arith.constant 0 : i32
    %9 = arith.cmpi eq, %arg1, %c0_i32_8 : i32
    %10 = arith.extui %9 : i1 to i32
    %c0_i32_9 = arith.constant 0 : i32
    %11 = arith.cmpi ne, %10, %c0_i32_9 : i32
    scf.if %11 {
      %c0_10 = arith.constant 0 : index
      %c0_11 = arith.constant 0 : index
      %12 = vector.load %arg9[%c0_10, %c0_11] : memref<16x128xf32, #tpu.memory_space<vmem>>, vector<16x128xf32>
      %c0_12 = arith.constant 0 : index
      %c0_13 = arith.constant 0 : index
      %13 = vector.load %arg5[%c0_12, %c0_13] : memref<1x128xf32, #tpu.memory_space<vmem>>, vector<1x128xf32>
      %14 = vector.broadcast %13 : vector<1x128xf32> to vector<16x128xf32>
      %15 = arith.addf %12, %14 : vector<16x128xf32>
      %16 = vector.extract_strided_slice %15 {offsets = [0, 0], sizes = [16, 32], strides = [1, 1]} : vector<16x128xf32> to vector<16x32xf32>
      %17 = arith.negf %16 : vector<16x32xf32>
      %18 = math.exp %17 : vector<16x32xf32>
      %cst_14 = arith.constant 1.000000e+00 : f32
      %19 = vector.broadcast %cst_14 : f32 to vector<16x32xf32>
      %20 = arith.addf %19, %18 : vector<16x32xf32>
      %21 = arith.divf %19, %20 : vector<16x32xf32>
      %22 = vector.extract_strided_slice %15 {offsets = [0, 32], sizes = [16, 32], strides = [1, 1]} : vector<16x128xf32> to vector<16x32xf32>
      %23 = arith.negf %22 : vector<16x32xf32>
      %24 = math.exp %23 : vector<16x32xf32>
      %cst_15 = arith.constant 1.000000e+00 : f32
      %25 = vector.broadcast %cst_15 : f32 to vector<16x32xf32>
      %26 = arith.addf %25, %24 : vector<16x32xf32>
      %27 = arith.divf %25, %26 : vector<16x32xf32>
      %28 = vector.extract_strided_slice %15 {offsets = [0, 64], sizes = [16, 32], strides = [1, 1]} : vector<16x128xf32> to vector<16x32xf32>
      %29 = math.tanh %28 : vector<16x32xf32>
      %30 = vector.extract_strided_slice %15 {offsets = [0, 96], sizes = [16, 32], strides = [1, 1]} : vector<16x128xf32> to vector<16x32xf32>
      %31 = arith.negf %30 : vector<16x32xf32>
      %32 = math.exp %31 : vector<16x32xf32>
      %cst_16 = arith.constant 1.000000e+00 : f32
      %33 = vector.broadcast %cst_16 : f32 to vector<16x32xf32>
      %34 = arith.addf %33, %32 : vector<16x32xf32>
      %35 = arith.divf %33, %34 : vector<16x32xf32>
      %c0_17 = arith.constant 0 : index
      %c0_18 = arith.constant 0 : index
      %36 = vector.load %arg4[%c0_17, %c0_18] : memref<16x32xf32, #tpu.memory_space<vmem>>, vector<16x32xf32>
      %37 = arith.mulf %27, %36 : vector<16x32xf32>
      %38 = arith.mulf %21, %29 : vector<16x32xf32>
      %39 = arith.addf %37, %38 : vector<16x32xf32>
      %40 = math.tanh %39 : vector<16x32xf32>
      %41 = arith.mulf %35, %40 : vector<16x32xf32>
      %cst_19 = arith.constant 0.000000e+00 : f32
      %42 = vector.broadcast %cst_19 : f32 to vector<16x32xf32>
      %43 = arith.maximumf %41, %42 : vector<16x32xf32>
      %c0_20 = arith.constant 0 : index
      %c0_21 = arith.constant 0 : index
      %44 = vector.load %arg6[%c0_20, %c0_21] : memref<1x32xf32, #tpu.memory_space<vmem>>, vector<1x32xf32>
      %45 = vector.broadcast %44 : vector<1x32xf32> to vector<16x32xf32>
      %46 = arith.mulf %43, %45 : vector<16x32xf32>
      %cst_22 = arith.constant dense<0.000000e+00> : vector<16xf32>
      %47 = vector.multi_reduction <add>, %46, %cst_22 [1] : vector<16x32xf32> to vector<16xf32>
      %48 = vector.shape_cast %47 : vector<16xf32> to vector<16x1xf32>
      %c0_23 = arith.constant 0 : index
      %c0_24 = arith.constant 0 : index
      %49 = memref.load %arg7[%c0_23, %c0_24] : memref<1x1xf32, #tpu.memory_space<smem>>
      %50 = vector.broadcast %49 : f32 to vector<16x1xf32>
      %51 = arith.addf %48, %50 : vector<16x1xf32>
      %52 = tpu.iota {dimensions = array<i32: 1>} : vector<16x64xi32>
      %c0_i32_25 = arith.constant 0 : i32
      %53 = vector.broadcast %c0_i32_25 : i32 to vector<16x64xi32>
      %54 = arith.cmpi eq, %52, %53 : vector<16x64xi32>
      %cst_26 = arith.constant 0.000000e+00 : f32
      %55 = vector.shape_cast %51 : vector<16x1xf32> to vector<16x1xf32>
      %56 = vector.broadcast %55 : vector<16x1xf32> to vector<16x64xf32>
      %57 = vector.broadcast %cst_26 : f32 to vector<16x64xf32>
      %58 = arith.select %54, %56, %57 : vector<16x64xi1>, vector<16x64xf32>
      %59 = tpu.concatenate %41, %39, %58 in 1 : vector<16x32xf32>, vector<16x32xf32>, vector<16x64xf32> -> vector<16x128xf32>
      %c0_27 = arith.constant 0 : index
      %c0_28 = arith.constant 0 : index
      %60 = vector.load %arg8[%c0_27, %c0_28] : memref<16x128xf32, #tpu.memory_space<vmem>>, vector<16x128xf32>
      tpu.vector_store %arg8[%c0_27, %c0_28], %59 {strides = array<i32>} : memref<16x128xf32, #tpu.memory_space<vmem>>, vector<16x128xf32>,
    } else {
    }
    return
  }
  func.func @transform_0(%arg0: i32, %arg1: i32) -> (i32, i32) {
    %c0_i32 = arith.constant 0 : i32
    return %arg0, %arg1 : i32, i32
  }
  func.func @transform_1(%arg0: i32, %arg1: i32) -> (i32, i32) {
    %c0_i32 = arith.constant 0 : i32
    %c0_i32_0 = arith.constant 0 : i32
    return %arg1, %c0_i32 : i32, i32
  }
  func.func @transform_2(%arg0: i32, %arg1: i32) -> (i32, i32) {
    %c0_i32 = arith.constant 0 : i32
    %c0_i32_0 = arith.constant 0 : i32
    return %arg0, %c0_i32 : i32, i32
  }
  func.func @transform_3(%arg0: i32, %arg1: i32) -> (i32, i32) {
    %c0_i32 = arith.constant 0 : i32
    %c0_i32_0 = arith.constant 0 : i32
    %c0_i32_1 = arith.constant 0 : i32
    return %c0_i32, %c0_i32_0 : i32, i32
  }
  func.func @transform_4(%arg0: i32, %arg1: i32) -> (i32, i32) {
    %c0_i32 = arith.constant 0 : i32
    %c0_i32_0 = arith.constant 0 : i32
    %c0_i32_1 = arith.constant 0 : i32
    return %c0_i32, %c0_i32_0 : i32, i32
  }
  func.func @transform_5(%arg0: i32, %arg1: i32) -> (i32, i32) {
    %c0_i32 = arith.constant 0 : i32
    %c0_i32_0 = arith.constant 0 : i32
    %c0_i32_1 = arith.constant 0 : i32
    return %c0_i32, %c0_i32_0 : i32, i32
  }
  func.func @transform_6(%arg0: i32, %arg1: i32) -> (i32, i32) {
    %c0_i32 = arith.constant 0 : i32
    %c0_i32_0 = arith.constant 0 : i32
    return %arg0, %c0_i32 : i32, i32
  }
}

</mosaic_0001>

<bundles_post_ra>
// kernel: recurrent_gcn_forward.1
= control target key start
LH: loop header
LB: loop body
LE: loop exit
PB: predicated region body
PF: predicated region fallthrough
CT: control target
= control target key end

     0   :  { %v358_v0 = vmov 0.0   ;;  %vm359_vm0 = vmmov 0   ;;  %s360_s7 = smov 32   ;;  %s362_s21 = smov 96   ;;  %vm243_vm1 = vcmask 261120   ;;  %v254_v57 = vlaneseq  ;;  %s464_s1 = inlined_call_operand.vmem [shape: bf16[128,128], index: 1, kind: input, shape index: {}]   ;;  %s465_s2 = inlined_call_operand.vmem [shape: f32[16,32], index: 2, kind: input, shape index: {}]   ;;  %s466_s0 = inlined_call_operand.vmem [shape: bf16[16,128], index: 0, kind: input, shape index: {}]   ;;  %s467_s3 = inlined_call_operand.vmem [shape: f32[1,128], index: 3, kind: input, shape index: {}]   ;;  %s468_s4 = inlined_call_operand.vmem [shape: f32[1,32], index: 4, kind: input, shape index: {}]   ;;  %s469_s5 = inlined_call_operand.<no memory space> [shape: f32[1,1], index: 5, kind: input, shape index: {}]   ;;  %s470_s6 = inlined_call_operand.vmem [shape: f32[16,128], index: 6, kind: output, shape index: {}]  }
   0x1   :  { %308 = vmatprep.subr.bf16.mxu0 %v358_v0  ;;  %v333_v1 = vld [vmem:[%s464_s1 + $0x38] sm:$0xff]   ;;  %324 = vmatprep.mubr.msk.bf16.mxu0 %vm359_vm0, %v358_v0  ;;  %v334_v2 = vld [vmem:[%s464_s1 + $0x30] sm:$0xff]   ;;  %v335_v3 = vld [vmem:[%s464_s1 + $0x28] sm:$0xff]   ;;  %v251_v59 = vstv %s469_s5  ;;  %vm277_vm3 = vcmask 523264  }
   0x2   :  { %309 = vmatpush3.bf16.msra.mxu0 %v333_v1  ;;  %v178_v4 = vld [vmem:[%s465_s2] sm:$0xff]  ;;  %v179_v6 = vld [vmem:[%s465_s2 + $0x8] sm:$0xff]  ;;  %v337_v7 = vld [vmem:[%s464_s1 + $0x18] sm:$0xff]   ;;  %v255_v58 = vand.u32 127, %v254_v57 }
   0x3   :  { %310 = vmatprep.subr.bf16.mxu0 %v358_v0  ;;  %v336_v5 = vld [vmem:[%s464_s1 + $0x20] sm:$0xff]   ;;  %182 = vrot.lane.b32.xlu1 %v178_v4, %s360_s7  ;;  %v338_v8 = vld [vmem:[%s464_s1 + $0x10] sm:$0xff]   ;;  %v339_v9 = vld [vmem:[%s464_s1 + $0x8] sm:$0xff]  }
   0x4   :  { %v340_v10 = vld [vmem:[%s464_s1] sm:$0xff]   ;;  %s361_s1 = smov 64   ;;  %vm256_vm2 = vcmp.eq.s32.totalorder %v255_v58, 0 }
   0x5   :  { %v341_v11 = vld [vmem:[%s466_s0] sm:$0xff]  }
   0x6   :  { %311 = vmatpush3.bf16.msra.mxu0 %v334_v2  ;;  %v295_v12 = vld [vmem:[%s467_s3] ss:$0 sm:$0xff] }
   0x7   :  { %312 = vmatprep.subr.bf16.mxu0 %v358_v0  ;;  %184 = vrot.lane.b32.xlu1 %v179_v6, %s360_s7  ;;  %v298_v42 = vld [vmem:[%s468_s4] ss:$0 sm:$0xff] }
   0xa   :  { %313 = vmatpush3.bf16.msra.mxu0 %v335_v3 }
   0xb   :  { %314 = vmatprep.subr.bf16.mxu0 %v358_v0 }
   0xe   :  { %315 = vmatpush3.bf16.msra.mxu0 %v336_v5 }
   0xf   :  { %316 = vmatprep.subr.bf16.mxu0 %v358_v0 }
  0x12   :  { %317 = vmatpush3.bf16.msra.mxu0 %v337_v7 }
  0x13   :  { %318 = vmatprep.subr.bf16.mxu0 %v358_v0 }
  0x16   :  { %319 = vmatpush3.bf16.msra.mxu0 %v338_v8 }
  0x17   :  { %320 = vmatprep.subr.bf16.mxu0 %v358_v0 }
  0x1a   :  { %321 = vmatpush3.bf16.msra.mxu0 %v339_v9 }
  0x1b   :  { %322 = vmatprep.subr.bf16.mxu0 %v358_v0 }
  0x1e   :  { %323 = vmatpush3.bf16.msra.mxu0 %v340_v10 }
  0x21   :  { %325 = vmatmul.mubr.bf16.vlgmr.msra.gmra.mxu0 %v341_v11 }
  0x75   :  { %v183_v33 = vpop.permute.xlu1 %182 }
  0x79   :  { %v185_v35 = vpop.permute.xlu1 %184 }
  0xe1   :  { %v139_v13 = vpop.f32.mrf.mxu0 }
  0xe2   :  { %v162_v14 = vadd.f32 %v295_v12, %v139_v13 }
  0xe3   :  { %v326_v15 = vpop.f32.mrf.mxu0 }
  0xe4   :  { %342 = vtanh.f32 %v162_v14  ;;  %v296_v21 = vmul.f32 -1.442695, %v162_v14 }
  0xe5   :  { %v142_v16 = vpop.f32.mrf.mxu0 }
  0xe6   :  { %v163_v17 = vadd.f32 %v295_v12, %v142_v16 }
  0xe7   :  { %v327_v18 = vpop.f32.mrf.mxu0 }
  0xe8   :  { %344 = vtanh.f32 %v163_v17  ;;  %v297_v22 = vmul.f32 -1.442695, %v163_v17 }
  0xe9   :  { %346 = vpow2.f32 %v296_v21 }
  0xea   :  { %348 = vpow2.f32 %v297_v22 }
  0xf1   :  { %v343_v19 = vpop.eup %342 }
  0xf2   :  { %192 = vrot.lane.b32.xlu0 %v343_v19, %s361_s1 }
  0xf5   :  { %v345_v20 = vpop.eup %344 }
  0xf6   :  { %194 = vrot.lane.b32.xlu0 %v345_v20, %s361_s1  ;;  %v347_v23 = vpop.eup %346 }
  0xf7   :  { %v170_v24 = vadd.f32 1.0, %v347_v23  ;;  %v349_v25 = vpop.eup %348 }
  0xf8   :  { %v171_v26 = vadd.f32 1.0, %v349_v25 }
  0xf9   :  { %350 = vrcp.f32 %v170_v24 }
  0xfa   :  { %352 = vrcp.f32 %v171_v26 }
 0x106   :  { %v351_v27 = vpop.eup %350 }
 0x107   :  { %v353_v30 = vpop.eup %352  ;;  %v188_v34 = vmul.f32 %v351_v27, %v183_v33 }
 0x108   :  { %v189_v38 = vmul.f32 %v353_v30, %v185_v35 }
 0x164   :  { %v193_v28 = vpop.permute.xlu0 %192 }
 0x165   :  { %v198_v29 = vmul.f32 %v351_v27, %v193_v28 }
 0x167   :  { %202 = vrot.lane.b32.xlu0 %v198_v29, %s360_s7 }
 0x168   :  { %v195_v31 = vpop.permute.xlu0 %194 }
 0x169   :  { %v199_v32 = vmul.f32 %v353_v30, %v195_v31 }
 0x16b   :  { %204 = vrot.lane.b32.xlu1 %v199_v32, %s360_s7 }
 0x1d9   :  { %v203_v36 = vpop.permute.xlu0 %202 }
 0x1da   :  { %v208_v37 = vadd.f32 %v203_v36, %v188_v34 }
 0x1dc   :  { %354 = vtanh.f32 %v208_v37 }
 0x1dd   :  { %v205_v39 = vpop.permute.xlu1 %204 }
 0x1de   :  { %v209_v40 = vadd.f32 %v205_v39, %v189_v38 }
 0x1e0   :  { %356 = vtanh.f32 %v209_v40 }
 0x1e9   :  { %v355_v41 = vpop.eup %354 }
 0x1ea   :  { %214 = vrot.lane.b32.xlu0 %v355_v41, %s361_s1 }
 0x1ed   :  { %v357_v43 = vpop.eup %356 }
 0x1ee   :  { %230 = vrot.lane.b32.xlu0 %v298_v42, %s362_s21  ;;  %216 = vrot.lane.b32.xlu1 %v357_v43, %s361_s1 }
 0x25c   :  { %v215_v44 = vpop.permute.xlu0 %214 }
 0x25d   :  { %v220_v45 = vmul.f32 %v351_v27, %v215_v44 }
 0x25f   :  { %v222_v46 = vmax.f32 %v220_v45, 0.0 }
 0x260   :  { %v231_v47 = vpop.permute.xlu0 %230  ;;  %v217_v48 = vpop.permute.xlu1 %216 }
 0x261   :  { %v233_v49 = vmul.f32 %v231_v47, %v222_v46  ;;  %v221_v50 = vmul.f32 %v353_v30, %v217_v48 }
 0x263   :  { %v223_v51 = vmax.f32 %v221_v50, 0.0  ;;  %237 = vrot.lane.b32.xlu1 %v233_v49, %s360_s7 }
 0x265   :  { %v234_v52 = vmul.f32 %v231_v47, %v223_v51 }
 0x267   :  { %239 = vrot.lane.b32.xlu0 %v234_v52, %s360_s7 }
 0x2d5   :  { %v238_v53 = vpop.permute.xlu1 %237 }
 0x2d6   :  { %v244_v54 = vsel %vm243_vm1, %v238_v53, 0.0 }
 0x2d7   :  { %245 = vadd.xlane.f32.xlu1 %v244_v54 }
 0x2d9   :  { %v240_v55 = vpop.permute.xlu0 %239 }
 0x2da   :  { %v247_v56 = vsel %vm243_vm1, %v240_v55, 0.0 }
 0x2db   :  { %248 = vadd.xlane.f32.xlu0 %v247_v56 }
 0x2e8   :  { %263 = vrot.lane.b32.xlu1 %v221_v50, %s360_s7 }
 0x2f1   :  { %261 = vrot.lane.b32.xlu0 %v220_v45, %s360_s7 }
 0x360   :  { %v246_v60 = vpop.xlane.xlu1 %245 }
 0x361   :  { %v252_v61 = vadd.f32 %v251_v59, %v246_v60 }
 0x363   :  { %v257_v62 = vsel %vm256_vm2, %v252_v61, 0.0 }
 0x364   :  { %v249_v63 = vpop.xlane.xlu0 %248  ;;  %269 = vrot.lane.b32.xlu1 %v257_v62, %s361_s1  ;;  %v264_v2 = vpop.permute.xlu1 %263 }
 0x365   :  { %v253_v0 = vadd.f32 %v251_v59, %v249_v63  ;;  %v276_v7 = vsel %vm243_vm1, %v264_v2, %v209_v40 }
 0x367   :  { %v258_v1 = vsel %vm256_vm2, %v253_v0, 0.0 }
 0x368   :  { %271 = vrot.lane.b32.xlu0 %v258_v1, %s361_s1  ;;  %v262_v3 = vpop.permute.xlu0 %261 }
 0x369   :  { %v275_v4 = vsel %vm243_vm1, %v262_v3, %v208_v37 }
 0x3d6   :  { %v270_v5 = vpop.permute.xlu1 %269 }
 0x3d7   :  { %v278_v6 = vsel %vm277_vm3, %v275_v4, %v270_v5 }
 0x3d8   :  { %280 = vst [vmem:[%s470_s6] sm:$0xff] %v278_v6 }
 0x3da   :  { %v272_v8 = vpop.permute.xlu0 %271 }
 0x3db   :  { %v279_v9 = vsel %vm277_vm3, %v276_v7, %v272_v8 }
 0x3dc   :  { %281 = vst [vmem:[%s470_s6 + $0x8] sm:$0xff] %v279_v9 }

</bundles_post_ra>
